<compile_context>
chip_gen: v7x
topology: tpu7x:2x2x1
jax: 0.10.0
libtpu: 0.0.40
codegen_flags: <defaults>
</compile_context>

<pallas_src>
import math

import jax
import jax.numpy as jnp
from jax.experimental import pallas as pl
from jax.experimental.pallas import tpu as pltpu

# ------------------------- model dimensions (small) -------------------------
B = 2    # batch
S = 8    # sequence length (== sublane tile, so per-batch row groups are tile-aligned)
E = 32   # hidden size

# packed-parameter layout (all section starts are multiples of 8 sublanes)
_W1_ROW = 0          # rows [0, E)       : w1
_W2_ROW = E          # rows [E, 2E)      : w2
_B1_ROW = 2 * E      # row  2E           : b1
_B2_ROW = 2 * E + 8  # row  2E + 8       : b2
_P_ROWS = 2 * E + 16


# ------------------------------ helpers -------------------------------------
def _erf(x):
    # Abramowitz & Stegun 7.1.26 (max abs err ~1.5e-7); exp/mul/add/select only.
    a1, a2, a3, a4, a5 = (0.254829592, -0.284496736, 1.421413741,
                          -1.453152027, 1.061405429)
    p = 0.3275911
    ax = jnp.abs(x)
    t = 1.0 / (1.0 + p * ax)
    poly = ((((a5 * t + a4) * t + a3) * t + a2) * t + a1) * t
    y = 1.0 - poly * jnp.exp(-ax * ax)
    return jnp.where(x < 0.0, -y, y)


def _gelu_exact(x):
    # x * 0.5 * (1 + erf(x / sqrt(2)))  -- matches the PyTorch module's gelu.
    return x * 0.5 * (1.0 + _erf(x * (1.0 / math.sqrt(2.0))))


# ------------------------------ Pallas kernel -------------------------------
def attention_pooling_kernel(x_ref, mask_ref, p_ref, out_ref):
    """Fused linear1 -> gelu -> linear2 -> +mask -> softmax(seq) -> weighted sum.

    x_ref:    (B*S, E)      input hidden states, batch folded onto sublanes
    mask_ref: (B*S, E)      additive pooling mask, pre-broadcast (lane dense)
    p_ref:    (2E+16, E)    packed [w1 | w2 | b1 | b2] (8-sublane aligned rows)
    out_ref:  (B, E)
    """
    x = x_ref[...]                                   # (B*S, E) f32

    # tile-aligned static slices of the packed parameter buffer (zero cost)
    w1 = p_ref[_W1_ROW:_W1_ROW + E, :]               # (E, E)
    w2 = p_ref[_W2_ROW:_W2_ROW + E, :]               # (E, E)
    b1 = p_ref[_B1_ROW:_B1_ROW + 1, :]               # (1, E) broadcast over rows
    b2 = p_ref[_B2_ROW:_B2_ROW + 1, :]               # (1, E)

    # linear1 -> gelu -> linear2: one full-batch MXU matmul each, kept in f32
    h = jnp.dot(x, w1, preferred_element_type=jnp.float32) + b1
    h = _gelu_exact(h)
    scores = jnp.dot(h, w2, preferred_element_type=jnp.float32) + b2
    scores = scores + mask_ref[...]                  # (B*S, E)

    # per-batch softmax over the sequence axis + weighted pooling.
    # Each batch occupies exactly one (8,128) sublane tile (S == 8), so these
    # static slices do not cross tile boundaries -> no relayout copies.
    for b in range(B):
        lo = b * S
        sb = scores[lo:lo + S, :]                    # (S, E)
        xb = x[lo:lo + S, :]                         # (S, E)
        m = jnp.max(sb, axis=0, keepdims=True)       # (1, E)  numerically-stable max
        e = jnp.exp(sb - m)                          # (S, E)
        denom = jnp.sum(e, axis=0, keepdims=True)    # (1, E)
        r = pl.reciprocal(denom, approx=True)        # EUP slot
        r = r * (2.0 - denom * r)                    # one Newton step (1e-5 tol)
        # (softmax(s) * x).sum(seq) ; r is row-constant, so factor it out
        out_ref[b:b + 1, :] = (jnp.sum(e * xb, axis=0, keepdims=True) * r
                               ).astype(out_ref.dtype)


# ------------------------------- wrapper ------------------------------------
def pack_params(params):
    """Pack w1/b1/w2/b2 into one (2E+16, E) buffer, sections 8-row aligned."""
    P = jnp.zeros((_P_ROWS, E), jnp.float32)
    P = P.at[_W1_ROW:_W1_ROW + E].set(params["w1"].astype(jnp.float32))
    P = P.at[_W2_ROW:_W2_ROW + E].set(params["w2"].astype(jnp.float32))
    P = P.at[_B1_ROW].set(params["b1"].reshape(E).astype(jnp.float32))
    P = P.at[_B2_ROW].set(params["b2"].reshape(E).astype(jnp.float32))
    return P


@jax.jit
def attention_pooling(x, pooling_mask, packed_params):
    # fold batch / broadcast mask at the JAX level (free; keeps the kernel
    # reshape-free and every operand lane-dense)
    x_flat = x.reshape(B * S, E).astype(jnp.float32)
    mask_flat = jnp.broadcast_to(pooling_mask.astype(jnp.float32),
                                 (B, S, E)).reshape(B * S, E)

    vmem = pl.BlockSpec(memory_space=pltpu.MemorySpace.VMEM)
    fn = pl.pallas_call(
        attention_pooling_kernel,
        out_shape=jax.ShapeDtypeStruct((B, E), jnp.float32),
        in_specs=[vmem, vmem, vmem],      # x, mask, packed params: 3 input DMAs
        out_specs=vmem,
        cost_estimate=pl.CostEstimate(
            flops=2 * (2 * B * S * E * E) + 8 * B * S * E,   # two matmuls + epilogue
            transcendentals=2 * B * S * E + 2 * B * E,       # erf-exp, softmax-exp, rcp
            bytes_accessed=4 * (2 * B * S * E + _P_ROWS * E + B * E),
        ),
    )
    return fn(x_flat, mask_flat, packed_params)


# --------------------------- pure-JAX reference ------------------------------
def ref_attention_pooling(x, mask, p):
    s = jax.nn.gelu(x @ p["w1"] + p["b1"], approximate=False)
    s = s @ p["w2"] + p["b2"] + mask
    probs = jax.nn.softmax(s, axis=1)
    return (probs * x).sum(axis=1)


# --------------------------------- main --------------------------------------
if __name__ == "__main__":
    key = jax.random.PRNGKey(0)
    k_x, k_w1, k_b1, k_w2, k_b2 = jax.random.split(key, 5)

    x = jax.random.normal(k_x, (B, S, E), jnp.float32)

    # additive pooling mask over sequence positions: 0 keep, -10000 drop
    keep = jnp.ones((B, S), jnp.float32).at[1, S - 2:].set(0.0)
    pooling_mask = ((1.0 - keep) * -10000.0).reshape(B, S, 1)

    n = lambda k, shp: (0.02 * jax.random.normal(k, shp)).astype(jnp.float32)
    params = dict(
        w1=n(k_w1, (E, E)), b1=n(k_b1, (1, E)),
        w2=n(k_w2, (E, E)), b2=n(k_b2, (1, E)),
    )
    packed = pack_params(params)   # built once, outside the hot path

    out = attention_pooling(x, pooling_mask, packed)
    jax.block_until_ready(out)

    ref = ref_attention_pooling(x, pooling_mask, params)
    assert out.shape == (B, E)
    assert jnp.allclose(out, ref, rtol=1e-5, atol=1e-5), \
        float(jnp.max(jnp.abs(out - ref)))

    print("KERNEL_OK")
</pallas_src>

<mosaic_0001>
module attributes {stable_mosaic.version = 11 : i64} {
  func.func @attention_pooling_kernel(%arg0: memref<16x32xf32, #tpu.memory_space<vmem>>, %arg1: memref<16x32xf32, #tpu.memory_space<vmem>>, %arg2: memref<80x32xf32, #tpu.memory_space<vmem>>, %arg3: memref<2x32xf32, #tpu.memory_space<vmem>>) attributes {dimension_semantics = [], scalar_prefetch = 0 : i64, scratch_operands = 0 : i64, tpu.core_type = #tpu.core_type<tc>} {
    %c0 = arith.constant 0 : index
    %c0_0 = arith.constant 0 : index
    %0 = vector.load %arg0[%c0, %c0_0] : memref<16x32xf32, #tpu.memory_space<vmem>>, vector<16x32xf32>
    %c0_1 = arith.constant 0 : index
    %c0_2 = arith.constant 0 : index
    %1 = vector.load %arg2[%c0_1, %c0_2] : memref<80x32xf32, #tpu.memory_space<vmem>>, vector<32x32xf32>
    %c32 = arith.constant 32 : index
    %c0_3 = arith.constant 0 : index
    %2 = vector.load %arg2[%c32, %c0_3] : memref<80x32xf32, #tpu.memory_space<vmem>>, vector<32x32xf32>
    %c64 = arith.constant 64 : index
    %c0_4 = arith.constant 0 : index
    %3 = vector.load %arg2[%c64, %c0_4] : memref<80x32xf32, #tpu.memory_space<vmem>>, vector<1x32xf32>
    %c72 = arith.constant 72 : index
    %c0_5 = arith.constant 0 : index
    %4 = vector.load %arg2[%c72, %c0_5] : memref<80x32xf32, #tpu.memory_space<vmem>>, vector<1x32xf32>
    %cst = arith.constant dense<0.000000e+00> : vector<16x32xf32>
    %5 = tpu.matmul %0, %1, %cst {dimension_numbers = #tpu.dot_dimension_numbers<[1], [0], [0], [1], [0, 0, 1, 1], [], []>} : vector<16x32xf32>, vector<32x32xf32>, vector<16x32xf32> -> vector<16x32xf32>
    %6 = vector.broadcast %3 : vector<1x32xf32> to vector<16x32xf32>
    %7 = arith.addf %5, %6 : vector<16x32xf32>
    %cst_6 = arith.constant 5.000000e-01 : f32
    %8 = vector.broadcast %cst_6 : f32 to vector<16x32xf32>
    %9 = arith.mulf %7, %8 : vector<16x32xf32>
    %cst_7 = arith.constant 0.707106769 : f32
    %10 = vector.broadcast %cst_7 : f32 to vector<16x32xf32>
    %11 = arith.mulf %7, %10 : vector<16x32xf32>
    %12 = math.absf %11 : vector<16x32xf32>
    %cst_8 = arith.constant 0.327591091 : f32
    %13 = vector.broadcast %cst_8 : f32 to vector<16x32xf32>
    %14 = arith.mulf %13, %12 : vector<16x32xf32>
    %cst_9 = arith.constant 1.000000e+00 : f32
    %15 = vector.broadcast %cst_9 : f32 to vector<16x32xf32>
    %16 = arith.addf %15, %14 : vector<16x32xf32>
    %cst_10 = arith.constant 1.000000e+00 : f32
    %17 = vector.broadcast %cst_10 : f32 to vector<16x32xf32>
    %18 = arith.divf %17, %16 : vector<16x32xf32>
    %cst_11 = arith.constant 1.06140542 : f32
    %19 = vector.broadcast %cst_11 : f32 to vector<16x32xf32>
    %20 = arith.mulf %19, %18 : vector<16x32xf32>
    %cst_12 = arith.constant -1.45315206 : f32
    %21 = vector.broadcast %cst_12 : f32 to vector<16x32xf32>
    %22 = arith.addf %20, %21 : vector<16x32xf32>
    %23 = arith.mulf %22, %18 : vector<16x32xf32>
    %cst_13 = arith.constant 1.42141378 : f32
    %24 = vector.broadcast %cst_13 : f32 to vector<16x32xf32>
    %25 = arith.addf %23, %24 : vector<16x32xf32>
    %26 = arith.mulf %25, %18 : vector<16x32xf32>
    %cst_14 = arith.constant -0.284496725 : f32
    %27 = vector.broadcast %cst_14 : f32 to vector<16x32xf32>
    %28 = arith.addf %26, %27 : vector<16x32xf32>
    %29 = arith.mulf %28, %18 : vector<16x32xf32>
    %cst_15 = arith.constant 0.254829586 : f32
    %30 = vector.broadcast %cst_15 : f32 to vector<16x32xf32>
    %31 = arith.addf %29, %30 : vector<16x32xf32>
    %32 = arith.mulf %31, %18 : vector<16x32xf32>
    %cst_16 = arith.constant 0.000000e+00 : f32
    %33 = vector.broadcast %cst_16 : f32 to vector<16x32xf32>
    %34 = arith.subf %33, %12 : vector<16x32xf32>
    %35 = arith.mulf %34, %12 : vector<16x32xf32>
    %36 = math.exp %35 : vector<16x32xf32>
    %37 = arith.mulf %32, %36 : vector<16x32xf32>
    %cst_17 = arith.constant 1.000000e+00 : f32
    %38 = vector.broadcast %cst_17 : f32 to vector<16x32xf32>
    %39 = arith.subf %38, %37 : vector<16x32xf32>
    %cst_18 = arith.constant 0.000000e+00 : f32
    %40 = vector.broadcast %cst_18 : f32 to vector<16x32xf32>
    %41 = arith.cmpf olt, %11, %40 : vector<16x32xf32>
    %cst_19 = arith.constant 0.000000e+00 : f32
    %42 = vector.broadcast %cst_19 : f32 to vector<16x32xf32>
    %43 = arith.subf %42, %39 : vector<16x32xf32>
    %44 = arith.select %41, %43, %39 : vector<16x32xi1>, vector<16x32xf32>
    %cst_20 = arith.constant 1.000000e+00 : f32
    %45 = vector.broadcast %cst_20 : f32 to vector<16x32xf32>
    %46 = arith.addf %45, %44 : vector<16x32xf32>
    %47 = arith.mulf %9, %46 : vector<16x32xf32>
    %cst_21 = arith.constant dense<0.000000e+00> : vector<16x32xf32>
    %48 = tpu.matmul %47, %2, %cst_21 {dimension_numbers = #tpu.dot_dimension_numbers<[1], [0], [0], [1], [0, 0, 1, 1], [], []>} : vector<16x32xf32>, vector<32x32xf32>, vector<16x32xf32> -> vector<16x32xf32>
    %49 = vector.broadcast %4 : vector<1x32xf32> to vector<16x32xf32>
    %50 = arith.addf %48, %49 : vector<16x32xf32>
    %c0_22 = arith.constant 0 : index
    %c0_23 = arith.constant 0 : index
    %51 = vector.load %arg1[%c0_22, %c0_23] : memref<16x32xf32, #tpu.memory_space<vmem>>, vector<16x32xf32>
    %52 = arith.addf %50, %51 : vector<16x32xf32>
    %53 = vector.extract_strided_slice %52 {offsets = [0, 0], sizes = [8, 32], strides = [1, 1]} : vector<16x32xf32> to vector<8x32xf32>
    %54 = vector.extract_strided_slice %0 {offsets = [0, 0], sizes = [8, 32], strides = [1, 1]} : vector<16x32xf32> to vector<8x32xf32>
    %cst_24 = arith.constant dense<0xFF800000> : vector<32xf32>
    %55 = vector.multi_reduction <maximumf>, %53, %cst_24 [0] : vector<8x32xf32> to vector<32xf32>
    %56 = vector.shape_cast %55 : vector<32xf32> to vector<1x32xf32>
    %57 = vector.broadcast %56 : vector<1x32xf32> to vector<8x32xf32>
    %58 = arith.subf %53, %57 : vector<8x32xf32>
    %59 = math.exp %58 : vector<8x32xf32>
    %cst_25 = arith.constant dense<0.000000e+00> : vector<32xf32>
    %60 = vector.multi_reduction <add>, %59, %cst_25 [0] : vector<8x32xf32> to vector<32xf32>
    %61 = vector.shape_cast %60 : vector<32xf32> to vector<1x32xf32>
    %62 = tpu.reciprocal %61 {approx = true} : vector<1x32xf32> -> vector<1x32xf32>
    %63 = arith.mulf %61, %62 : vector<1x32xf32>
    %cst_26 = arith.constant 2.000000e+00 : f32
    %64 = vector.broadcast %cst_26 : f32 to vector<1x32xf32>
    %65 = arith.subf %64, %63 : vector<1x32xf32>
    %66 = arith.mulf %62, %65 : vector<1x32xf32>
    %67 = arith.mulf %59, %54 : vector<8x32xf32>
    %cst_27 = arith.constant dense<0.000000e+00> : vector<32xf32>
    %68 = vector.multi_reduction <add>, %67, %cst_27 [0] : vector<8x32xf32> to vector<32xf32>
    %69 = vector.shape_cast %68 : vector<32xf32> to vector<1x32xf32>
    %70 = arith.mulf %69, %66 : vector<1x32xf32>
    %c0_28 = arith.constant 0 : index
    %c0_29 = arith.constant 0 : index
    %71 = vector.load %arg3[%c0_28, %c0_29] : memref<2x32xf32, #tpu.memory_space<vmem>>, vector<1x32xf32>
    tpu.vector_store %arg3[%c0_28, %c0_29], %70 {strides = array<i32>} : memref<2x32xf32, #tpu.memory_space<vmem>>, vector<1x32xf32>,
    %72 = vector.extract_strided_slice %52 {offsets = [8, 0], sizes = [8, 32], strides = [1, 1]} : vector<16x32xf32> to vector<8x32xf32>
    %73 = vector.extract_strided_slice %0 {offsets = [8, 0], sizes = [8, 32], strides = [1, 1]} : vector<16x32xf32> to vector<8x32xf32>
    %cst_30 = arith.constant dense<0xFF800000> : vector<32xf32>
    %74 = vector.multi_reduction <maximumf>, %72, %cst_30 [0] : vector<8x32xf32> to vector<32xf32>
    %75 = vector.shape_cast %74 : vector<32xf32> to vector<1x32xf32>
    %76 = vector.broadcast %75 : vector<1x32xf32> to vector<8x32xf32>
    %77 = arith.subf %72, %76 : vector<8x32xf32>
    %78 = math.exp %77 : vector<8x32xf32>
    %cst_31 = arith.constant dense<0.000000e+00> : vector<32xf32>
    %79 = vector.multi_reduction <add>, %78, %cst_31 [0] : vector<8x32xf32> to vector<32xf32>
    %80 = vector.shape_cast %79 : vector<32xf32> to vector<1x32xf32>
    %81 = tpu.reciprocal %80 {approx = true} : vector<1x32xf32> -> vector<1x32xf32>
    %82 = arith.mulf %80, %81 : vector<1x32xf32>
    %cst_32 = arith.constant 2.000000e+00 : f32
    %83 = vector.broadcast %cst_32 : f32 to vector<1x32xf32>
    %84 = arith.subf %83, %82 : vector<1x32xf32>
    %85 = arith.mulf %81, %84 : vector<1x32xf32>
    %86 = arith.mulf %78, %73 : vector<8x32xf32>
    %cst_33 = arith.constant dense<0.000000e+00> : vector<32xf32>
    %87 = vector.multi_reduction <add>, %86, %cst_33 [0] : vector<8x32xf32> to vector<32xf32>
    %88 = vector.shape_cast %87 : vector<32xf32> to vector<1x32xf32>
    %89 = arith.mulf %88, %85 : vector<1x32xf32>
    %c1 = arith.constant 1 : index
    %c0_34 = arith.constant 0 : index
    %90 = vector.load %arg3[%c1, %c0_34] : memref<2x32xf32, #tpu.memory_space<vmem>>, vector<1x32xf32>
    tpu.vector_store %arg3[%c1, %c0_34], %89 {strides = array<i32>} : memref<2x32xf32, #tpu.memory_space<vmem>>, vector<1x32xf32>,
    return
  }
}

</mosaic_0001>

<bundles_post_ra>
// kernel: attention_pooling.1
= control target key start
LH: loop header
LB: loop body
LE: loop exit
PB: predicated region body
PF: predicated region fallthrough
CT: control target
= control target key end

     0   :  { %vm31_vm0 = vcmask 261120   ;;  %s523_s0 = inlined_call_operand.vmem [shape: f32[16,32], index: 0, kind: input, shape index: {}]   ;;  %s524_s1 = inlined_call_operand.vmem [shape: f32[16,32], index: 1, kind: input, shape index: {}]   ;;  %s525_s2 = inlined_call_operand.vmem [shape: f32[80,32], index: 2, kind: input, shape index: {}]   ;;  %s526_s3 = inlined_call_operand.hbm [shape: f32[2,32], index: 3, kind: output, shape index: {}]  }
   0x1   :  { %v17_v0 = vld [vmem:[%s525_s2] sm:$0xff]  ;;  %v18_v1 = vld [vmem:[%s525_s2 + $0x8] sm:$0xff]  ;;  %v19_v2 = vld [vmem:[%s525_s2 + $0x10] sm:$0xff] }
   0x2   :  { %v373_v3 = vpack.c.bf16 %v18_v1, %v17_v0  ;;  %v20_v4 = vld [vmem:[%s525_s2 + $0x18] sm:$0xff]  ;;  %v466_v5 = vld [vmem:[%s523_s0] sm:$0xff] }
   0x3   :  { %v377_v6 = vpack.c.bf16 %v20_v4, %v19_v2  ;;  %359 = vmatprep.mubr.msk.f32.mxu0 %vm31_vm0, %v466_v5 }
   0x4   :  { %8 = vsyncpa [#allocation3], 0  ;;  %374 = vmatprep.subr.bf16.mxu0 %v373_v3  ;;  %v473_v7 = vld [vmem:[%s523_s0 + $0x8] sm:$0xff]  ;;  %v21_v8 = vld [vmem:[%s525_s2 + $0x20] sm:$0xff]  ;;  %vm286_vm3 = vcmask 253952  }
   0x5   :  { %376 = vmatpush3.bf16.msra.mxu0 %v373_v3  ;;  %v22_v9 = vld [vmem:[%s525_s2 + $0x28] sm:$0xff]  ;;  %v23_v11 = vld [vmem:[%s525_s2 + $0x30] sm:$0xff]  ;;  %v24_v12 = vld [vmem:[%s525_s2 + $0x38] sm:$0xff] }
   0x6   :  { %378 = vmatprep.subr.bf16.mxu0 %v377_v6  ;;  %v381_v10 = vpack.c.bf16 %v22_v9, %v21_v8  ;;  %v385_v13 = vpack.c.bf16 %v24_v12, %v23_v11  ;;  %v333_v14 = vld [vmem:[%s525_s2 + $0x40] ss:$0 sm:$0xff]  ;;  %v253_v9 = vld [vmem:[%s524_s1 + $0x8] sm:$0xff] }
   0x7   :  { %v252_v12 = vld [vmem:[%s524_s1] sm:$0xff]  ;;  %s430_s1 = smov [#allocation2]  }
   0x8   :  { %382 = vmatprep.subr.bf16.mxu1 %v381_v10 }
   0x9   :  { %380 = vmatpush3.bf16.msra.mxu0 %v377_v6  ;;  %384 = vmatpush3.bf16.msra.mxu1 %v381_v10  ;;  %v336_v6 = vld [vmem:[%s525_s2 + $0x48] ss:$0 sm:$0xff]  ;;  %s325_s2 = sshll.u32 %s430_s1, 4  ;;  %s326_s2 = int_to_ptr.vmem [resolvable:$true] %s325_s2 }
   0xa   :  { %386 = vmatprep.subr.bf16.mxu1 %v385_v13  ;;  %s406_s12 = scalar_lea.vmem %s326_s2, 32  ;;  %p411_p1 = scmp.lt.s32.totalorder %s326_s2, %s326_s2 }
   0xb   :  { %p407_p0 = scmp.ne.s32.totalorder %s326_s2, %s406_s12  ;;  %p412_p2 = scmp.lt.s32.totalorder %s406_s12, %s406_s12 }
   0xc   :  { %360 = vmatmul.mubr.msk.f32.vlgmr.msra.gmra.mrb[0].mxu0 %vm31_vm0, %v473_v7 }
   0xd   :  { %388 = vmatpush3.bf16.msra.mxu1 %v385_v13  ;;  %p413_p3 = por %p412_p2, %p411_p1 }
   0xf   :  { %p414_p4 = pnand %p413_p3, %p407_p0 }
  0xdf   :  { %v361_v15 = vpop.f32.mrb[0].mxu0 }
  0xe0   :  { %v110_v16 = vadd.f32 %v361_v15, %v333_v14  ;;  %v104_v17 = vpop.f32.mrb[1].mxu0 }
  0xe1   :  { %v105_v18 = vadd.f32 %v333_v14, %v104_v17 }
  0xe2   :  { %v116_v19 = vmul.f32 0.70710677, %v110_v16  ;;  %v114_v2 = vmul.f32 0.5, %v110_v16 }
  0xe3   :  { %v115_v20 = vmul.f32 0.70710677, %v105_v18  ;;  %v113_v0 = vmul.f32 0.5, %v105_v18 }
  0xe4   :  { %v118_v21 = vand.u32 2147483647, %v116_v19  ;;  %vm158_vm1 = vcmp.lt.f32.partialorder %v116_v19, 0.0 }
  0xe5   :  { %v117_v22 = vand.u32 2147483647, %v115_v20  ;;  %vm157_vm2 = vcmp.lt.f32.partialorder %v115_v20, 0.0 }
  0xe6   :  { %v120_v23 = vmul.f32 0.3275911, %v118_v21  ;;  %v146_v27 = vsub.f32 0.0, %v118_v21 }
  0xe7   :  { %v119_v24 = vmul.f32 0.3275911, %v117_v22  ;;  %v145_v28 = vsub.f32 0.0, %v117_v22 }
  0xe8   :  { %v122_v25 = vadd.f32 1.0, %v120_v23  ;;  %v148_v30 = vmul.f32 %v146_v27, %v118_v21 }
  0xe9   :  { %v121_v26 = vadd.f32 1.0, %v119_v24  ;;  %v147_v33 = vmul.f32 %v145_v28, %v117_v22 }
  0xea   :  { %390 = vrcp.f32 %v122_v25  ;;  %v151_v36 = vmul.f32 1.442695, %v148_v30 }
  0xeb   :  { %392 = vrcp.f32 %v121_v26  ;;  %v149_v39 = vmul.f32 1.442695, %v147_v33 }
  0xec   :  { %394 = vpow2.f32 %v151_v36 }
  0xed   :  { %396 = vpow2.f32 %v149_v39 }
  0xf4   :  { %v391_v29 = vpop.eup %390 }
  0xf5   :  { %v393_v31 = vpop.eup %392  ;;  %v128_v32 = vmul.f32 1.0614054, %v391_v29 }
  0xf6   :  { %v127_v34 = vmul.f32 1.0614054, %v393_v31  ;;  %v395_v52 = vpop.eup %394 }
  0xf7   :  { %v130_v35 = vadd.f32 -1.4531521, %v128_v32  ;;  %v397_v54 = vpop.eup %396 }
  0xf8   :  { %v129_v37 = vadd.f32 -1.4531521, %v127_v34 }
  0xf9   :  { %v132_v38 = vmul.f32 %v391_v29, %v130_v35 }
  0xfa   :  { %v131_v40 = vmul.f32 %v393_v31, %v129_v37 }
  0xfb   :  { %v134_v41 = vadd.f32 1.4214138, %v132_v38 }
  0xfc   :  { %v133_v42 = vadd.f32 1.4214138, %v131_v40 }
  0xfd   :  { %v136_v43 = vmul.f32 %v391_v29, %v134_v41 }
  0xfe   :  { %v135_v44 = vmul.f32 %v393_v31, %v133_v42 }
  0xff   :  { %v138_v45 = vadd.f32 -0.28449672, %v136_v43 }
 0x100   :  { %v137_v46 = vadd.f32 -0.28449672, %v135_v44 }
 0x101   :  { %v140_v47 = vmul.f32 %v391_v29, %v138_v45 }
 0x102   :  { %v139_v48 = vmul.f32 %v393_v31, %v137_v46 }
 0x103   :  { %v142_v49 = vadd.f32 0.2548296, %v140_v47 }
 0x104   :  { %v141_v50 = vadd.f32 0.2548296, %v139_v48 }
 0x105   :  { %v144_v51 = vmul.f32 %v391_v29, %v142_v49 }
 0x106   :  { %v143_v53 = vmul.f32 %v393_v31, %v141_v50 }
 0x107   :  { %v154_v55 = vmul.f32 %v395_v52, %v144_v51 }
 0x108   :  { %v153_v56 = vmul.f32 %v397_v54, %v143_v53 }
 0x109   :  { %v156_v57 = vsub.f32 1.0, %v154_v55 }
 0x10a   :  { %v155_v58 = vsub.f32 1.0, %v153_v56 }
 0x10b   :  { %v160_v59 = vsub.f32 0.0, %v156_v57 }
 0x10c   :  { %v159_v60 = vsub.f32 0.0, %v155_v58 }
 0x10d   :  { %v162_v61 = vsel %vm158_vm1, %v160_v59, %v156_v57 }
 0x10e   :  { %v164_v62 = vadd.f32 1.0, %v162_v61  ;;  %v161_v63 = vsel %vm157_vm2, %v159_v60, %v155_v58 }
 0x10f   :  { %v163_v1 = vadd.f32 1.0, %v161_v63 }
 0x110   :  { %v166_v4 = vmul.f32 %v164_v62, %v114_v2 }
 0x111   :  { %v165_v3 = vmul.f32 %v163_v1, %v113_v0 }
 0x113   :  { %370 = vmatprep.mubr.msk.f32.mxu1 %vm31_vm0, %v165_v3 }
 0x114   :  { %371 = vmatmul.mubr.msk.f32.vlgmr.msra.gmra.mrb[0].mxu1 %vm31_vm0, %v166_v4 }
 0x1e7   :  { %v372_v8 = vpop.f32.mrb[0].mxu1 }
 0x1e8   :  { %v249_v10 = vadd.f32 %v372_v8, %v336_v6  ;;  %v243_v11 = vpop.f32.mrb[1].mxu1 }
 0x1e9   :  { %v244_v13 = vadd.f32 %v336_v6, %v243_v11 }
 0x1ea   :  { %v255_v14 = vadd.f32 %v253_v9, %v249_v10 }
 0x1eb   :  { %v254_v15 = vadd.f32 %v252_v12, %v244_v13 }
 0x1ec   :  { %v288_v16 = vsel %vm31_vm0, %v255_v14, -inf }
 0x1ed   :  { %v289_v17 = vrot.slane %v288_v16, 4  ;;  %v256_v18 = vsel %vm31_vm0, %v254_v15, -inf }
 0x1ee   :  { %v257_v19 = vrot.slane %v256_v18, 4 }
 0x1ef   :  { %v290_v20 = vmax.f32 %v288_v16, %v289_v17 }
 0x1f0   :  { %v258_v21 = vmax.f32 %v256_v18, %v257_v19 }
 0x1f1   :  { %v291_v22 = vrot.slane %v290_v20, 2 }
 0x1f2   :  { %v259_v23 = vrot.slane %v258_v21, 2 }
 0x1f3   :  { %v292_v24 = vmax.f32 %v290_v20, %v291_v22 }
 0x1f4   :  { %v260_v25 = vmax.f32 %v258_v21, %v259_v23 }
 0x1f5   :  { %v293_v26 = vrot.slane %v292_v24, 1 }
 0x1f6   :  { %v261_v27 = vrot.slane %v260_v25, 1 }
 0x1f7   :  { %v294_v28 = vmax.f32 %v292_v24, %v293_v26 }
 0x1f8   :  { %v262_v29 = vmax.f32 %v260_v25, %v261_v27 }
 0x1f9   :  { %v295_v30 = vsub.f32 %v255_v14, %v294_v28 }
 0x1fa   :  { %v263_v31 = vsub.f32 %v254_v15, %v262_v29 }
 0x1fb   :  { %v296_v32 = vmul.f32 1.442695, %v295_v30 }
 0x1fc   :  { %v264_v33 = vmul.f32 1.442695, %v263_v31 }
 0x1fd   :  { %398 = vpow2.f32 %v296_v32 }
 0x1fe   :  { %400 = vpow2.f32 %v264_v33 }
 0x207   :  { %v399_v34 = vpop.eup %398 }
 0x208   :  { %v401_v35 = vpop.eup %400  ;;  %v298_v36 = vsel %vm31_vm0, %v399_v34, 0.0  ;;  %v309_v39 = vmul.f32 %v399_v34, %v473_v7 }
 0x209   :  { %v299_v37 = vrot.slane %v298_v36, 4  ;;  %v266_v38 = vsel %vm31_vm0, %v401_v35, 0.0  ;;  %v277_v41 = vmul.f32 %v401_v35, %v466_v5 }
 0x20a   :  { %v267_v40 = vrot.slane %v266_v38, 4  ;;  %v310_v45 = vsel %vm31_vm0, %v309_v39, 0.0 }
 0x20b   :  { %v300_v42 = vadd.f32 %v299_v37, %v298_v36  ;;  %v278_v47 = vsel %vm31_vm0, %v277_v41, 0.0  ;;  %v311_v50 = vrot.slane %v310_v45, 4 }
 0x20c   :  { %v268_v43 = vadd.f32 %v267_v40, %v266_v38  ;;  %v279_v51 = vrot.slane %v278_v47, 4 }
 0x20d   :  { %v301_v44 = vrot.slane %v300_v42, 2  ;;  %v312_v7 = vadd.f32 %v311_v50, %v310_v45 }
 0x20e   :  { %v269_v46 = vrot.slane %v268_v43, 2  ;;  %v280_v56 = vadd.f32 %v279_v51, %v278_v47 }
 0x20f   :  { %v302_v48 = vadd.f32 %v301_v44, %v300_v42  ;;  %v313_v5 = vrot.slane %v312_v7, 2 }
 0x210   :  { %v270_v49 = vadd.f32 %v269_v46, %v268_v43  ;;  %v281_v57 = vrot.slane %v280_v56, 2 }
 0x211   :  { %v303_v52 = vrot.slane %v302_v48, 1  ;;  %v314_v58 = vadd.f32 %v313_v5, %v312_v7 }
 0x212   :  { %v271_v53 = vrot.slane %v270_v49, 1  ;;  %v282_v59 = vadd.f32 %v281_v57, %v280_v56 }
 0x213   :  { %v304_v54 = vadd.f32 %v303_v52, %v302_v48  ;;  %v315_v63 = vrot.slane %v314_v58, 1 }
 0x214   :  { %v272_v55 = vadd.f32 %v271_v53, %v270_v49  ;;  %v283_v1 = vrot.slane %v282_v59, 1 }
 0x215   :  { %402 = vrcp.f32 %v304_v54  ;;  %v316_v6 = vadd.f32 %v315_v63, %v314_v58 }
 0x216   :  { %404 = vrcp.f32 %v272_v55  ;;  %v284_v9 = vadd.f32 %v283_v1, %v282_v59 }
 0x21f   :  { %v403_v60 = vpop.eup %402 }
 0x220   :  { %v405_v61 = vpop.eup %404  ;;  %v306_v62 = vmul.f32 %v403_v60, %v304_v54 }
 0x221   :  { %v274_v0 = vmul.f32 %v405_v61, %v272_v55 }
 0x222   :  { %v307_v2 = vsub.f32 2.0, %v306_v62 }
 0x223   :  { %v275_v3 = vsub.f32 2.0, %v274_v0 }
 0x224   :  { %v308_v4 = vmul.f32 %v403_v60, %v307_v2 }
 0x225   :  { %v276_v8 = vmul.f32 %v405_v61, %v275_v3 }
 0x226   :  { %v317_v10 = vmul.f32 %v316_v6, %v308_v4 }
 0x227   :  { %v285_v11 = vmul.f32 %v284_v9, %v276_v8 }
 0x228   :  { %318 = vst.msk [vmem:[#allocation2 + $0x1] sm:$0x1] %vm286_vm3, %v317_v10 }
 0x229   :  { %287 = vst.msk [vmem:[#allocation2] sm:$0x1] %vm286_vm3, %v285_v11 }
 0x22a   :  { %417 = shalt.err (!%p414_p4)
}
 0x22b   :  { %s418_s15 = scalar_lea.hbm %s526_s3, 32 }
 0x22c   :  { %p419_p5 = scmp.ne.s32.totalorder %s526_s3, %s418_s15  ;;  %p422_p6 = scmp.lt.u32.totalorder %s418_s15, %s526_s3 }
 0x22e   :  { %p424_p7 = pnand %p422_p6, %p419_p5 }
 0x230   :  { %427 = shalt.err (!%p424_p7)
}
 0x231   :  { %328 = dma.vmem_to_hbm [thread:$0]  %s326_s2, 32, %s526_s3, [#allocation3]  }
 0x232   :  { %428 = dma.done.wait [#allocation3], 32  }
 0x233   :  { %429 = vsyncadd [#allocation3], 4294967264 }
 0x234   :  { %332 = vsyncpa [#allocation3], 1 }

</bundles_post_ra>
